<compile_context>
chip_gen: v5e
topology: v5e:2x2
jax: 0.10.0
libtpu: 0.0.40
codegen_flags: <defaults>
</compile_context>

<pallas_src>
import jax
import jax.numpy as jnp
from jax.experimental import pallas as pl
from jax.experimental.pallas import tpu as pltpu


def _round_up(x, m):
    return (x + m - 1) // m * m


def _nw_kernel(w_ref, q_ref, k_ref, v_ref, o_ref):
    # w_ref: SMEM (1,); q_ref: (T, 1); k_ref / v_ref: (T, M); o_ref: (8, T // 8)
    rows8, lanes = o_ref.shape          # T == 8 * lanes
    m = k_ref.shape[-1]

    c = w_ref[0] * w_ref[0] * -0.5      # fold -((.) * w)^2 / 2 into one scalar

    # View the row tile as (8, T//8, M): only leading/sublane dims are split (the lane
    # dim M is untouched), and the per-row results land directly in the lane-dense
    # (8, T//8) output layout without a cross-lane reshape at the end.
    q = q_ref[...].reshape(rows8, lanes, 1)
    k = k_ref[...].reshape(rows8, lanes, m)
    v = v_ref[...].reshape(rows8, lanes, m)

    d = q - k
    s = d * d * c                                         # == -((q - k) * w)^2 / 2

    # Numerically-stable softmax-weighted average along M (the lane axis).
    s_max = jnp.max(s, axis=-1, keepdims=True)
    e = jnp.exp(s - s_max)
    denom = jnp.sum(e, axis=-1)                           # (8, T//8)
    num = jnp.sum(e * v, axis=-1)                         # (8, T//8) == the torch bmm
    o_ref[...] = num * pl.reciprocal(denom, approx=True)  # EUP reciprocal (idle slot)


def nw_kernel_regression(queries, keys, values, w, *, tile_n=None):
    """queries: (N,), keys/values: (N, M), w: (1,)  ->  (N,) float32."""
    n, m = keys.shape
    assert queries.shape == (n,) and values.shape == (n, m)

    q2 = queries.reshape(n, 1).astype(jnp.float32)
    k2 = keys.astype(jnp.float32)
    v2 = values.astype(jnp.float32)
    w1 = w.astype(jnp.float32).reshape(1)

    if tile_n is None:
        # Largest row tile keeping double-buffered keys+values well inside scoped VMEM
        # on every chip (v5e/v6e 128 MiB, v7x 64 MiB); >=512-row tiles already reach
        # ~85% of the HBM roofline, so cap at 1024 rows.
        kv_budget = 8 * 1024 * 1024                  # bytes for K+V across both buffers
        rows = max(8, kv_budget // (2 * 2 * m * 4))  # 2 arrays * 2 buffers * M * 4B/row
        tile_n = min(1024, (rows // 8) * 8)
    tile_n = max(8, min(_round_up(tile_n, 8), _round_up(n, 8)))

    n_pad = _round_up(n, tile_n)
    if n_pad != n:
        pad = n_pad - n
        q2 = jnp.pad(q2, ((0, pad), (0, 0)))
        k2 = jnp.pad(k2, ((0, pad), (0, 0)))
        v2 = jnp.pad(v2, ((0, pad), (0, 0)))

    num_tiles = n_pad // tile_n
    lanes = tile_n // 8                              # lane width of the output slab

    out = pl.pallas_call(
        _nw_kernel,
        grid=(num_tiles,),
        out_shape=jax.ShapeDtypeStruct((num_tiles * 8, lanes), jnp.float32),
        in_specs=[
            pl.BlockSpec(memory_space=pltpu.SMEM),             # w (scalar parameter)
            pl.BlockSpec((tile_n, 1), lambda i: (i, 0)),       # queries row tile
            pl.BlockSpec((tile_n, m), lambda i: (i, 0)),       # keys row tile
            pl.BlockSpec((tile_n, m), lambda i: (i, 0)),       # values row tile
        ],
        out_specs=pl.BlockSpec((8, lanes), lambda i: (i, 0)),  # lane-dense result slab
        compiler_params=pltpu.CompilerParams(
            dimension_semantics=("parallel",),   # shard row tiles across TCs (v7x)
            vmem_limit_bytes=32 * 1024 * 1024,
        ),
    )(w1, q2, k2, v2)

    # Tile i's rows occupy flat positions [i*tile_n, (i+1)*tile_n) in row-major order.
    return out.reshape(-1)[:n]


def _reference(queries, keys, values, w):
    # Pure-JAX reference mirroring the torch forward exactly.
    n, m = keys.shape
    q = jnp.repeat(queries, m).reshape(n, m)
    s = -(((q - keys) * w[0]) ** 2) / 2
    attn = jax.nn.softmax(s, axis=1)
    return jnp.einsum("nm,nm->n", attn, values)


if __name__ == "__main__":
    key = jax.random.PRNGKey(0)
    kq, kk, kv, kw = jax.random.split(key, 4)

    N, M = 40, 64
    queries = jax.random.uniform(kq, (N,), dtype=jnp.float32) * 5.0
    keys = jax.random.uniform(kk, (N, M), dtype=jnp.float32) * 5.0
    values = jax.random.normal(kv, (N, M), dtype=jnp.float32)
    w = jax.random.uniform(kw, (1,), dtype=jnp.float32)   # the module's single parameter

    # Multi-tile grid path (3 row tiles of 16, including row padding 40 -> 48).
    out_tiled = jax.block_until_ready(
        nw_kernel_regression(queries, keys, values, w, tile_n=16))
    # Auto tile-size path (single tile at this small size).
    out_auto = jax.block_until_ready(
        nw_kernel_regression(queries, keys, values, w))

    ref = _reference(queries, keys, values, w)
    assert out_tiled.shape == (N,) and out_auto.shape == (N,)
    # pl.reciprocal(approx=True) on the softmax denominator introduces a tiny relative
    # error; 1e-3 tolerance comfortably covers it while still catching real bugs.
    assert jnp.allclose(out_tiled, ref, atol=1e-3, rtol=1e-3), (out_tiled, ref)
    assert jnp.allclose(out_auto, ref, atol=1e-3, rtol=1e-3), (out_auto, ref)

    print("KERNEL_OK")
</pallas_src>

<mosaic_0001>
module attributes {stable_mosaic.version = 11 : i64} {
  func.func @_nw_kernel(%arg0: i32, %arg1: memref<1xf32, #tpu.memory_space<smem>>, %arg2: memref<16x1xf32, #tpu.memory_space<vmem>>, %arg3: memref<16x64xf32, #tpu.memory_space<vmem>>, %arg4: memref<16x64xf32, #tpu.memory_space<vmem>>, %arg5: memref<8x2xf32, #tpu.memory_space<vmem>>) attributes {dimension_semantics = [#tpu.dimension_semantics<parallel>], iteration_bounds = array<i64: 3>, scalar_prefetch = 0 : i64, scratch_operands = 0 : i64, tpu.core_type = #tpu.core_type<tc>, window_params = [{transform_indices = @transform_0, window_bounds = array<i64: 1>}, {transform_indices = @transform_1, window_bounds = array<i64: 16, 1>}, {transform_indices = @transform_2, window_bounds = array<i64: 16, 64>}, {transform_indices = @transform_3, window_bounds = array<i64: 16, 64>}, {transform_indices = @transform_4, window_bounds = array<i64: 8, 2>}]} {
    %c0 = arith.constant 0 : index
    %0 = memref.load %arg1[%c0] : memref<1xf32, #tpu.memory_space<smem>>
    %c0_0 = arith.constant 0 : index
    %1 = memref.load %arg1[%c0_0] : memref<1xf32, #tpu.memory_space<smem>>
    %2 = arith.mulf %0, %1 : f32
    %cst = arith.constant -5.000000e-01 : f32
    %3 = arith.mulf %2, %cst : f32
    %c0_1 = arith.constant 0 : index
    %c0_2 = arith.constant 0 : index
    %4 = vector.load %arg2[%c0_1, %c0_2] : memref<16x1xf32, #tpu.memory_space<vmem>>, vector<16x1xf32>
    %5 = vector.shape_cast %4 : vector<16x1xf32> to vector<8x2x1xf32>
    %c0_3 = arith.constant 0 : index
    %c0_4 = arith.constant 0 : index
    %6 = vector.load %arg3[%c0_3, %c0_4] : memref<16x64xf32, #tpu.memory_space<vmem>>, vector<16x64xf32>
    %7 = vector.shape_cast %6 : vector<16x64xf32> to vector<8x2x64xf32>
    %c0_5 = arith.constant 0 : index
    %c0_6 = arith.constant 0 : index
    %8 = vector.load %arg4[%c0_5, %c0_6] : memref<16x64xf32, #tpu.memory_space<vmem>>, vector<16x64xf32>
    %9 = vector.shape_cast %8 : vector<16x64xf32> to vector<8x2x64xf32>
    %10 = vector.broadcast %5 : vector<8x2x1xf32> to vector<8x2x64xf32>
    %11 = arith.subf %10, %7 : vector<8x2x64xf32>
    %12 = arith.mulf %11, %11 : vector<8x2x64xf32>
    %13 = vector.broadcast %3 : f32 to vector<8x2x64xf32>
    %14 = arith.mulf %12, %13 : vector<8x2x64xf32>
    %cst_7 = arith.constant dense<0xFF800000> : vector<8x2xf32>
    %15 = vector.multi_reduction <maximumf>, %14, %cst_7 [2] : vector<8x2x64xf32> to vector<8x2xf32>
    %16 = vector.shape_cast %15 : vector<8x2xf32> to vector<8x2x1xf32>
    %17 = vector.broadcast %16 : vector<8x2x1xf32> to vector<8x2x64xf32>
    %18 = arith.subf %14, %17 : vector<8x2x64xf32>
    %19 = math.exp %18 : vector<8x2x64xf32>
    %cst_8 = arith.constant dense<0.000000e+00> : vector<8x2xf32>
    %20 = vector.multi_reduction <add>, %19, %cst_8 [2] : vector<8x2x64xf32> to vector<8x2xf32>
    %21 = arith.mulf %19, %9 : vector<8x2x64xf32>
    %cst_9 = arith.constant dense<0.000000e+00> : vector<8x2xf32>
    %22 = vector.multi_reduction <add>, %21, %cst_9 [2] : vector<8x2x64xf32> to vector<8x2xf32>
    %23 = tpu.reciprocal %20 {approx = true} : vector<8x2xf32> -> vector<8x2xf32>
    %24 = arith.mulf %22, %23 : vector<8x2xf32>
    %c0_10 = arith.constant 0 : index
    %c0_11 = arith.constant 0 : index
    %25 = vector.load %arg5[%c0_10, %c0_11] : memref<8x2xf32, #tpu.memory_space<vmem>>, vector<8x2xf32>
    tpu.vector_store %arg5[%c0_10, %c0_11], %24 {strides = array<i32>} : memref<8x2xf32, #tpu.memory_space<vmem>>, vector<8x2xf32>,
    return
  }
  func.func @transform_0(%arg0: i32) -> i32 {
    %c0_i32 = arith.constant 0 : i32
    %c0_i32_0 = arith.constant 0 : i32
    return %c0_i32 : i32
  }
  func.func @transform_1(%arg0: i32) -> (i32, i32) {
    %c0_i32 = arith.constant 0 : i32
    %c0_i32_0 = arith.constant 0 : i32
    return %arg0, %c0_i32 : i32, i32
  }
  func.func @transform_2(%arg0: i32) -> (i32, i32) {
    %c0_i32 = arith.constant 0 : i32
    %c0_i32_0 = arith.constant 0 : i32
    return %arg0, %c0_i32 : i32, i32
  }
  func.func @transform_3(%arg0: i32) -> (i32, i32) {
    %c0_i32 = arith.constant 0 : i32
    %c0_i32_0 = arith.constant 0 : i32
    return %arg0, %c0_i32 : i32, i32
  }
  func.func @transform_4(%arg0: i32) -> (i32, i32) {
    %c0_i32 = arith.constant 0 : i32
    %c0_i32_0 = arith.constant 0 : i32
    return %arg0, %c0_i32 : i32, i32
  }
}

</mosaic_0001>

<bundles_post_ra>
// kernel: tpu_custom_call.1
= control target key start
LH: loop header
LB: loop body
LE: loop exit
PB: predicated region body
PF: predicated region fallthrough
CT: control target
= control target key end

     0   :  { %s967_s0 = inlined_call_operand.<no memory space> [shape: f32[1], index: 0, kind: input, shape index: {}]   ;;  %s968_s1 = inlined_call_operand.vmem [shape: f32[48,1], index: 1, kind: input, shape index: {}]   ;;  %s969_s2 = inlined_call_operand.vmem [shape: f32[48,64], index: 2, kind: input, shape index: {}]   ;;  %s970_s3 = inlined_call_operand.hbm [shape: f32[48,64], index: 3, kind: input, shape index: {}]   ;;  %s971_s4 = inlined_call_operand.vmem [shape: f32[24,2], index: 4, kind: output, shape index: {}]  }
   0x1   :  { %9 = sst [smem:[#allocation2]] %s967_s0 }
   0x2   :  { %10 = vsyncpa [#allocation4], 0 }
   0x3   :  { %12 = vsyncpa [#allocation4 + $0x1], 0  ;;  %s835_s17 = smov 0   ;;  %s837_s18 = smov 0  }
   0x4   :  { %s839_s19 = smov 0   ;;  %s841_s20 = smov 0  }
   0x5 LB: > { %s854_s0 = sadd.s32 4294967295, %s801_s20   ;;  %s857_s21 = sadd.s32 1, %s801_s20   ;;  %s801_s20 = sphi %s841_s20, %s978_s20   ;;  %s797_s19 = sphi %s839_s19, %s977_s19   ;;  %s793_s18 = sphi %s837_s18, %s976_s18   ;;  %s789_s17 = sphi %s835_s17, %s975_s17  }
   0x6   : > { %s95_s22 = ssub.s32 %s801_s20, %s857_s21  ;;  %s98_s23 = sadd.s32 1, %s797_s19 }
   0x7   : > { %p96_p0 = scmp.eq.s32.totalorder %s95_s22, 0  ;;  %p105_p1 = scmp.ne.s32.totalorder %s797_s19, %s793_s18 }
   0x8   : > { %p106_p2 = scmp.eq.s32.totalorder %s801_s20, 0  ;;  %p111_p3 = scmp.ne.s32.totalorder %s793_s18, %s789_s17 }
   0x9   : > { %s867_s24 = scalar_select %p96_p0, %s797_s19, %s98_s23  }
   0xa   : > { %p869_p4 = por %p106_p2, %p105_p1  ;;  %p112_p5 = scmp.eq.s32.totalorder %s854_s0, 0 }
   0xb   : > { %p665_p6 = scmp.lt.s32.totalorder %s801_s20, 3  ;;  %s182_s27 = sand.u32 1, %s797_s19  }
   0xc   : > { %p875_p7 = por %p112_p5, %p111_p3  ;;  %s646_s28 = sshll.u32 %s182_s27, 4 }
   0xd   : > { %s658_s29 = sshll.u32 %s801_s20, 4  ;;  %s186_s7 = scalar_lea.vmem [#allocation3], %s646_s28 }
   0xe   : > { %s191_s6 = scalar_lea.hbm %s970_s3, %s658_s29  ;;  %s194_s8 = sshll.u32 %s186_s7, 4  ;;  %s195_s8 = int_to_ptr.vmem [resolvable:$true] %s194_s8 }
   0xf   : > { %s192_s9 = sshll.u32 %s191_s6, 4  ;;  %p886_p8 = pnand %p665_p6, %p869_p4  ;;  %s193_s9 = int_to_ptr.hbm [resolvable:$true] %s192_s9 }
  0x10   : > { %p649_p9 = scmp.ge.s32.totalorder %s801_s20, 1  ;;  %s183_s11 = scalar_lea.sflag [#allocation4], %s182_s27 }
  0x11   : > { %s737_s12 = sshra.s32 %s193_s9, 4  ;;  %p741_p11 = pneg %p886_p8  ;;  %s738_s12 = int_to_ptr.hbm [resolvable:$true] %s737_s12 }
  0x12   : > { %s739_s13 = scalar_lea.hbm %s738_s12, 16  ;;  %s744_s16 = scalar_lea.hbm %s970_s3, 48 }
  0x13   : > { %p740_p10 = scmp.ne.s32.totalorder %s738_s12, %s739_s13  ;;  %p745_p0 = scmp.lt.s32.totalorder %s738_s12, %s970_s3 }
  0x14   : > { %p746_p1 = scmp.lt.s32.totalorder %s744_s16, %s739_s13 }
  0x15   : > { %p742_p12 = pnand %p741_p11, %p740_p10 }
  0x16   : > { %p747_p2 = por %p746_p1, %p745_p0 }
  0x17   : > { %p743_p13 = pneg %p742_p12 }
  0x19   : > { %p748_p3 = pnand %p747_p2, %p743_p13 }
  0x1b   : > { %751 = shalt.err (!%p748_p3)
}
  0x1c   : > { %s803_s23 = smov 128   ;;  %s804_s25 = smov 8  }
  0x1d   : > { %664 = dma.hbm_to_vmem [thread:$0]  (!%p886_p8), %s193_s9, 256, %s195_s8, %s183_s11, %s803_s23, %s803_s23, %s804_s25  }
  0x1e   : > { %p202_p4 = scmp.lt.s32.totalorder %s801_s20, 4 }
  0x20   : > { %p203_p5 = pnand %p649_p9, %p202_p4 }
  0x21   : > { %s208_s27 = sand.u32 (!%p203_p5), 1, %s793_s18  }
  0x22   : > { %206 = sbr.rel (%p203_p5) target bundleno = 470 (0x1d6), region = 36  ;;  %s905_s28 = sshll.u32 (!%p203_p5), %s208_s27, 4 }
  0x23   : > { %s209_s29 = scalar_lea.sflag (!%p203_p5), [#allocation4], %s208_s27  ;;  %s212_s30 = scalar_lea.vmem (!%p203_p5), [#allocation3], %s905_s28 }
  0x27   : > { %784 = dma.done.wait (%p875_p7), %s209_s29, 256  }
  0x28   : > { %786 = vsyncadd (%p875_p7), %s209_s29, 4294967040  ;;  %s651_s5 = sshll.u32 %s854_s0, 1  ;;  %v805_v0 = vmov 0   ;;  %s264_s26 = sld [smem:[#allocation2]]  ;;  %v806_v9 = vmov 269488144  }
  0x29   : > { %702 = vset.pattern.permute.xlu0 %v805_v0  ;;  %p248_p6 = scmp.lt.s32.totalorder %s651_s5, 5  ;;  %704 = vset.pattern.permute.xlu1 %v805_v0  ;;  %v314_v10 = vunpack.c.l.s4 %v806_v9  ;;  %vm398_vm0 = vcmask 517120   ;;  %p260_p7 = scmp.lt.s32.totalorder %s854_s0, 2  ;;  %vm537_vm1 = vcmask 1041409   ;;  %vm539_vm2 = vcmask 1042434  }
  0x2a   : > { %703 = vset.pattern.permute.xlu2 %v805_v0  ;;  %vm541_vm3 = vcmask 1043459   ;;  %vm543_vm4 = vcmask 1044484   ;;  %vm545_vm5 = vcmask 1045509   ;;  %vm547_vm6 = vcmask 1046534  }
  0x2b   : > { %s980_s5 = smov (!%p248_p6, %s651_s5), 5  ;;  %v315_v12 = vunpack.c.0.s8 %v314_v10  ;;  %s982_s0 = smov (!%p260_p7, %s854_s0), 2  ;;  %vm549_vm7 = vcmask 1047559   ;;  %vm552_vm8 = vcmask 15360  }
  0x2c   : > { %s652_s20 = sshll.u32 %s980_s5, 3  ;;  %s655_s14 = sshll.u32 %s982_s0, 3 }
  0x2d   : > { %s251_s8 = scalar_lea.vmem %s968_s1, %s652_s20  ;;  %s257_s11 = scalar_lea.vmem %s969_s2, %s652_s20 }
  0x2e   : > { %v267_v1 = vld [vmem:[%s251_s8] sm:$0xff]  ;;  %v268_v2 = vld [vmem:[%s251_s8 + $0x8] sm:$0xff]  ;;  %s265_s12 = smul.f32 %s264_s26, %s264_s26  ;;  %s263_s17 = scalar_lea.vmem %s971_s4, %s655_s14 }
  0x2f   : > { %310 = vperm.xlu0 %702, %v267_v1   ;;  %v272_v3 = vrot.slane %v267_v1, 4  ;;  %342 = vperm.xlu2 %703, %v268_v2   ;;  %v271_v4 = vrot.slane %v267_v1, 2  ;;  %v274_v5 = vrot.slane %v268_v2, 2  ;;  %v273_v6 = vrot.slane %v267_v1, 6  ;;  %v277_v13 = vld [vmem:[%s257_s11] sm:$0xff]  ;;  %v278_v18 = vld [vmem:[%s257_s11 + $0x8] sm:$0xff] }
  0x30   : > { %v275_v7 = vrot.slane %v268_v2, 4  ;;  %v276_v8 = vrot.slane %v268_v2, 6  ;;  %s266_s13 = smul.f32 -0.5, %s265_s12  ;;  %v282_v17 = vrot.slane %v277_v13, 4  ;;  %v281_v29 = vrot.slane %v277_v13, 2 }
  0x31   : > { %326 = vperm.xlu1 %704, %v272_v3   ;;  %v284_v31 = vrot.slane %v278_v18, 2  ;;  %v283_v37 = vrot.slane %v277_v13, 6  ;;  %v285_v46 = vrot.slane %v278_v18, 4  ;;  %v286_v54 = vrot.slane %v278_v18, 6 }
  0x32   : > { %v389_v23 = vstv %s266_s13 }
  0x37   : > { %318 = vperm.xlu0 %702, %v271_v4   ;;  %350 = vperm.xlu2 %703, %v274_v5  }
  0x39   : > { %334 = vperm.xlu1 %704, %v273_v6  }
  0x3f   : > { %358 = vperm.xlu0 %702, %v275_v7  }
  0x41   : > { %366 = vperm.xlu1 %704, %v276_v8  }
  0x89   : > { %v343_v11 = vpop.permute.xlu2 %342 }
  0x8a   : > { %v348_v14 = vperm.slane %v343_v11, %v315_v12 }
  0x8c   : > { %v377_v20 = vsub.f32 %v348_v14, %v278_v18 }
  0x8e   : > { %v385_v27 = vmul.f32 %v377_v20, %v377_v20 }
  0x90   : > { %v394_v42 = vmul.f32 %v389_v23, %v385_v27 }
  0x91   : > { %v351_v26 = vpop.permute.xlu2 %350 }
  0x92   : > { %v356_v33 = vperm.slane %v351_v26, %v315_v12  ;;  %v411_v48 = vsel %vm398_vm0, %v394_v42, -inf }
  0x94   : > { %v378_v43 = vsub.f32 %v356_v33, %v284_v31 }
  0x96   : > { %v386_v50 = vmul.f32 %v378_v43, %v378_v43 }
  0x98   : > { %v395_v59 = vmul.f32 %v389_v23, %v386_v50  ;;  %v294_v50 = vld [vmem:[%s212_s30 + $0x8] sm:$0xff] }
  0x9a   : > { %v414_v0 = vsel %vm398_vm0, %v395_v59, -inf }
  0xa1   : > { %v311_v15 = vpop.permute.xlu0 %310 }
  0xa2   : > { %v316_v16 = vperm.slane %v311_v15, %v315_v12 }
  0xa3   : > { %v327_v19 = vpop.permute.xlu1 %326 }
  0xa4   : > { %v373_v21 = vsub.f32 %v316_v16, %v277_v13  ;;  %v332_v22 = vperm.slane %v327_v19, %v315_v12 }
  0xa6   : > { %v381_v24 = vmul.f32 %v373_v21, %v373_v21  ;;  %v375_v25 = vsub.f32 %v332_v22, %v282_v17 }
  0xa8   : > { %v383_v28 = vmul.f32 %v375_v25, %v375_v25  ;;  %v390_v30 = vmul.f32 %v389_v23, %v381_v24 }
  0xa9   : > { %v319_v32 = vpop.permute.xlu0 %318 }
  0xaa   : > { %v324_v34 = vperm.slane %v319_v32, %v315_v12  ;;  %v399_v35 = vsel %vm398_vm0, %v390_v30, -inf  ;;  %v392_v36 = vmul.f32 %v389_v23, %v383_v28 }
  0xab   : > { %v335_v38 = vpop.permute.xlu1 %334  ;;  %400 = vmax.xlane.f32.xlu2 %v399_v35 }
  0xac   : > { %v374_v39 = vsub.f32 %v324_v34, %v281_v29  ;;  %v340_v40 = vperm.slane %v335_v38, %v315_v12  ;;  %v405_v41 = vsel %vm398_vm0, %v392_v36, -inf }
  0xad   : > { %406 = vmax.xlane.f32.xlu1 %v405_v41  ;;  %v293_v41 = vld [vmem:[%s212_s30] sm:$0xff] }
  0xae   : > { %v382_v44 = vmul.f32 %v374_v39, %v374_v39  ;;  %v376_v45 = vsub.f32 %v340_v40, %v283_v37 }
  0xb0   : > { %v391_v47 = vmul.f32 %v389_v23, %v382_v44  ;;  %v384_v53 = vmul.f32 %v376_v45, %v376_v45 }
  0xb1   : > { %v359_v49 = vpop.permute.xlu0 %358 }
  0xb2   : > { %v364_v51 = vperm.slane %v359_v49, %v315_v12  ;;  %v402_v52 = vsel %vm398_vm0, %v391_v47, -inf  ;;  %v393_v61 = vmul.f32 %v389_v23, %v384_v53 }
  0xb3   : > { %v367_v55 = vpop.permute.xlu1 %366  ;;  %403 = vmax.xlane.f32.xlu0 %v402_v52  ;;  %412 = vmax.xlane.f32.xlu2 %v411_v48  ;;  %v298_v48 = vrot.slane %v293_v41, 4 }
  0xb4   : > { %v379_v56 = vsub.f32 %v364_v51, %v285_v46  ;;  %v372_v57 = vperm.slane %v367_v55, %v315_v12  ;;  %v408_v2 = vsel %vm398_vm0, %v393_v61, -inf }
  0xb6   : > { %v387_v58 = vmul.f32 %v379_v56, %v379_v56  ;;  %v380_v60 = vsub.f32 %v372_v57, %v286_v54  ;;  %v301_v56 = vrot.slane %v294_v50, 4  ;;  %v300_v57 = vrot.slane %v294_v50, 2 }
  0xb8   : > { %v396_v62 = vmul.f32 %v389_v23, %v387_v58  ;;  %v388_v1 = vmul.f32 %v380_v60, %v380_v60 }
  0xba   : > { %v417_v63 = vsel %vm398_vm0, %v396_v62, -inf  ;;  %v397_v3 = vmul.f32 %v389_v23, %v388_v1 }
  0xbb   : > { %418 = vmax.xlane.f32.xlu1 %v417_v63  ;;  %415 = vmax.xlane.f32.xlu0 %v414_v0 }
  0xbc   : > { %409 = vmax.xlane.f32.xlu2 %v408_v2  ;;  %v420_v4 = vsel %vm398_vm0, %v397_v3, -inf  ;;  %v302_v2 = vrot.slane %v294_v50, 6 }
  0xc4   : > { %421 = vmax.xlane.f32.xlu2 %v420_v4 }
 0x11e   : > { %v401_v5 = vpop.xlane.xlu2 %400 }
 0x11f   : > { %v423_v6 = vsub.f32 %v390_v30, %v401_v5 }
 0x120   : > { %v407_v7 = vpop.xlane.xlu1 %406 }
 0x121   : > { %v431_v8 = vmul.f32 1.442695, %v423_v6  ;;  %v425_v9 = vsub.f32 %v392_v36, %v407_v7 }
 0x123   : > { %705 = vpow2.f32 %v431_v8  ;;  %v435_v10 = vmul.f32 1.442695, %v425_v9 }
 0x125   : > { %707 = vpow2.f32 %v435_v10 }
 0x126   : > { %v404_v11 = vpop.xlane.xlu0 %403  ;;  %v413_v12 = vpop.xlane.xlu2 %412 }
 0x127   : > { %v427_v13 = vsub.f32 %v394_v42, %v413_v12  ;;  %v424_v16 = vsub.f32 %v391_v47, %v404_v11  ;;  %v299_v47 = vrot.slane %v293_v41, 6 }
 0x129   : > { %v706_v14 = vpop.eup %705  ;;  %v439_v15 = vmul.f32 1.442695, %v427_v13  ;;  %v433_v20 = vmul.f32 1.442695, %v424_v16 }
 0x12a   : > { %v447_v17 = vsel %vm398_vm0, %v706_v14, 0.0  ;;  %v471_v42 = vmul.f32 %v706_v14, %v293_v41 }
 0x12b   : > { %v708_v18 = vpop.eup %707  ;;  %448 = vadd.xlane.f32.xlu0 %v447_v17  ;;  %709 = vpow2.f32 %v439_v15  ;;  %v527_v17 = vlaneseq }
 0x12c   : > { %v453_v19 = vsel %vm398_vm0, %v708_v18, 0.0  ;;  %711 = vpow2.f32 %v433_v20  ;;  %v479_v45 = vsel %vm398_vm0, %v471_v42, 0.0  ;;  %v473_v52 = vmul.f32 %v708_v18, %v298_v48 }
 0x12d   : > { %454 = vadd.xlane.f32.xlu2 %v453_v19 }
 0x12e   : > { %v416_v21 = vpop.xlane.xlu0 %415  ;;  %v419_v24 = vpop.xlane.xlu1 %418  ;;  %v485_v55 = vsel %vm398_vm0, %v473_v52, 0.0 }
 0x12f   : > { %v428_v22 = vsub.f32 %v395_v59, %v416_v21  ;;  %v410_v23 = vpop.xlane.xlu2 %409  ;;  %v429_v29 = vsub.f32 %v396_v62, %v419_v24  ;;  %v297_v59 = vrot.slane %v293_v41, 2  ;;  %v528_v21 = vand.u32 127, %v527_v17 }
 0x130   : > { %v426_v25 = vsub.f32 %v393_v61, %v410_v23 }
 0x131   : > { %v441_v26 = vmul.f32 1.442695, %v428_v22  ;;  %v710_v27 = vpop.eup %709  ;;  %v443_v31 = vmul.f32 1.442695, %v429_v29 }
 0x132   : > { %v437_v28 = vmul.f32 1.442695, %v426_v25  ;;  %v459_v30 = vsel %vm398_vm0, %v710_v27, 0.0  ;;  %v712_v33 = vpop.eup %711  ;;  %v475_v53 = vmul.f32 %v710_v27, %v294_v50 }
 0x133   : > { %713 = vpow2.f32 %v441_v26  ;;  %460 = vadd.xlane.f32.xlu1 %v459_v30  ;;  %v450_v39 = vsel %vm398_vm0, %v712_v33, 0.0  ;;  %v472_v62 = vmul.f32 %v712_v33, %v297_v59 }
 0x134   : > { %715 = vpow2.f32 %v437_v28  ;;  %v491_v58 = vsel %vm398_vm0, %v475_v53, 0.0 }
 0x135   : > { %717 = vpow2.f32 %v443_v31  ;;  %v482_v1 = vsel %vm398_vm0, %v472_v62, 0.0 }
 0x137   : > { %v422_v32 = vpop.xlane.xlu2 %421 }
 0x138   : > { %v430_v34 = vsub.f32 %v397_v3, %v422_v32 }
 0x139   : > { %v714_v35 = vpop.eup %713 }
 0x13a   : > { %v445_v36 = vmul.f32 1.442695, %v430_v34  ;;  %v716_v37 = vpop.eup %715  ;;  %v462_v38 = vsel %vm398_vm0, %v714_v35, 0.0  ;;  %v476_v61 = vmul.f32 %v714_v35, %v300_v57 }
 0x13b   : > { %463 = vadd.xlane.f32.xlu2 %v462_v38  ;;  %451 = vadd.xlane.f32.xlu1 %v450_v39  ;;  %v456_v40 = vsel %vm398_vm0, %v716_v37, 0.0  ;;  %v718_v43 = vpop.eup %717  ;;  %v474_v51 = vmul.f32 %v716_v37, %v299_v47 }
 0x13c   : > { %719 = vpow2.f32 %v445_v36  ;;  %457 = vadd.xlane.f32.xlu0 %v456_v40  ;;  %v465_v49 = vsel %vm398_vm0, %v718_v43, 0.0  ;;  %v477_v60 = vmul.f32 %v718_v43, %v301_v56  ;;  %v494_v0 = vsel %vm398_vm0, %v476_v61, 0.0 }
 0x13d   : > { %v488_v54 = vsel %vm398_vm0, %v474_v51, 0.0 }
 0x13e   : > { %v497_v63 = vsel %vm398_vm0, %v477_v60, 0.0 }
 0x142   : > { %v720_v44 = vpop.eup %719 }
 0x143   : > { %v468_v46 = vsel %vm398_vm0, %v720_v44, 0.0  ;;  %480 = vadd.xlane.f32.xlu2 %v479_v45  ;;  %v478_v3 = vmul.f32 %v720_v44, %v302_v2 }
 0x144   : > { %469 = vadd.xlane.f32.xlu1 %v468_v46  ;;  %466 = vadd.xlane.f32.xlu0 %v465_v49 }
 0x145   : > { %v500_v4 = vsel %vm398_vm0, %v478_v3, 0.0 }
 0x14b   : > { %489 = vadd.xlane.f32.xlu2 %v488_v54 }
 0x14c   : > { %486 = vadd.xlane.f32.xlu1 %v485_v55  ;;  %492 = vadd.xlane.f32.xlu0 %v491_v58 }
 0x153   : > { %498 = vadd.xlane.f32.xlu2 %v497_v63 }
 0x154   : > { %495 = vadd.xlane.f32.xlu1 %v494_v0  ;;  %483 = vadd.xlane.f32.xlu0 %v482_v1 }
 0x15c   : > { %501 = vadd.xlane.f32.xlu0 %v500_v4 }
 0x19e   : > { %v449_v7 = vpop.xlane.xlu0 %448 }
 0x19f   : > { %721 = vrcp.f32 %v449_v7 }
 0x1a0   : > { %v455_v5 = vpop.xlane.xlu2 %454 }
 0x1a1   : > { %723 = vrcp.f32 %v455_v5 }
 0x1a5   : > { %v722_v18 = vpop.eup %721 }
 0x1a6   : > { %v461_v6 = vpop.xlane.xlu1 %460 }
 0x1a7   : > { %v724_v19 = vpop.eup %723 }
 0x1ae   : > { %v452_v8 = vpop.xlane.xlu1 %451  ;;  %v464_v9 = vpop.xlane.xlu2 %463 }
 0x1af   : > { %v458_v10 = vpop.xlane.xlu0 %457  ;;  %725 = vrcp.f32 %v452_v8 }
 0x1b0   : > { %727 = vrcp.f32 %v458_v10 }
 0x1b1   : > { %729 = vrcp.f32 %v461_v6 }
 0x1b2   : > { %731 = vrcp.f32 %v464_v9 }
 0x1b5   : > { %v726_v20 = vpop.eup %725 }
 0x1b6   : > { %v481_v12 = vpop.xlane.xlu2 %480  ;;  %v728_v23 = vpop.eup %727 }
 0x1b7   : > { %v470_v11 = vpop.xlane.xlu1 %469  ;;  %v467_v13 = vpop.xlane.xlu0 %466  ;;  %v511_v22 = vmul.f32 %v722_v18, %v481_v12 }
 0x1b8   : > { %733 = vrcp.f32 %v467_v13  ;;  %v730_v27 = vpop.eup %729 }
 0x1b9   : > { %v732_v30 = vpop.eup %731  ;;  %735 = vrcp.f32 %v470_v11  ;;  %v529_v32 = vperm.slane %v511_v22, %v528_v21 }
 0x1be   : > { %v490_v16 = vpop.xlane.xlu2 %489  ;;  %v734_v37 = vpop.eup %733 }
 0x1bf   : > { %v487_v14 = vpop.xlane.xlu1 %486  ;;  %v493_v15 = vpop.xlane.xlu0 %492  ;;  %v514_v28 = vmul.f32 %v728_v23, %v490_v16 }
 0x1c0   : > { %v513_v24 = vmul.f32 %v724_v19, %v487_v14  ;;  %v515_v31 = vmul.f32 %v730_v27, %v493_v15  ;;  %v736_v45 = vpop.eup %735 }
 0x1c1   : > { %v532_v38 = vperm.slane %v514_v28, %v528_v21 }
 0x1c2   : > { %v531_v36 = vperm.slane %v513_v24, %v528_v21  ;;  %v533_v40 = vperm.slane %v515_v31, %v528_v21 }
 0x1c6   : > { %v499_v35 = vpop.xlane.xlu2 %498 }
 0x1c7   : > { %v484_v25 = vpop.xlane.xlu0 %483  ;;  %v496_v26 = vpop.xlane.xlu1 %495  ;;  %v517_v42 = vmul.f32 %v734_v37, %v499_v35 }
 0x1c8   : > { %v512_v29 = vmul.f32 %v726_v20, %v484_v25  ;;  %v516_v34 = vmul.f32 %v732_v30, %v496_v26 }
 0x1c9   : > { %v535_v50 = vperm.slane %v517_v42, %v528_v21 }
 0x1ca   : > { %v530_v33 = vperm.slane %v512_v29, %v528_v21  ;;  %v534_v43 = vperm.slane %v516_v34, %v528_v21 }
 0x1cc   : > { %v538_v39 = vsel %vm537_vm1, %v530_v33, %v529_v32 }
 0x1cd   : > { %v540_v41 = vsel %vm539_vm2, %v531_v36, %v538_v39 }
 0x1ce   : > { %v542_v44 = vsel %vm541_vm3, %v532_v38, %v540_v41 }
 0x1cf   : > { %v544_v46 = vsel %vm543_vm4, %v533_v40, %v542_v44  ;;  %v502_v47 = vpop.xlane.xlu0 %501 }
 0x1d0   : > { %v546_v48 = vsel %vm545_vm5, %v534_v43, %v544_v46  ;;  %v518_v49 = vmul.f32 %v736_v45, %v502_v47 }
 0x1d1   : > { %v548_v52 = vsel %vm547_vm6, %v535_v50, %v546_v48 }
 0x1d2   : > { %v536_v51 = vperm.slane %v518_v49, %v528_v21 }
 0x1d4   : > { %v550_v53 = vsel %vm549_vm7, %v536_v51, %v548_v52 }
 0x1d5   : > { %553 = vst.msk [vmem:[%s263_s17] sm:$0xff] %vm552_vm8, %v550_v53 }
 0x1d6 PF: > { %p15_p8 = scmp.ge.s32.totalorder %s857_s21, 5   ;;  %s975_s17 = smov %s793_s18 }
 0x1d7   : > { %s976_s18 = smov %s797_s19  ;;  %s977_s19 = smov %s867_s24 }
 0x1d8   : > { %s978_s20 = smov %s857_s21  ;;  %17 = sbr.rel (!%p15_p8) target bundleno = 5 (0x5), region = 82 }
 0x1dd   :  { %573 = vsyncpa [#allocation4], 1 }
 0x1de   :  { %575 = vsyncpa [#allocation4 + $0x1], 1 }

</bundles_post_ra>
